<compile_context>
chip_gen: v7x
topology: tpu7x:2x2x1
jax: 0.10.0
libtpu: 0.0.40
codegen_flags: <defaults>
</compile_context>

<pallas_src>
import functools

import jax
import jax.numpy as jnp
from jax.experimental import pallas as pl
from jax.experimental.pallas import tpu as pltpu


def _round_up(x, m):
    return ((x + m - 1) // m) * m


def _nbytes(a):
    return int(a.size) * jnp.dtype(a.dtype).itemsize


def _vmem_limit_bytes():
    # Generation-aware VMEM budget: ~75% of physical (96 MiB on v5e/v6e's
    # 128 MiB, 48 MiB on v7x's 64 MiB) instead of a one-size 32 MiB cap.
    try:
        cap = pltpu.get_tpu_info().vmem_capacity_bytes
    except Exception:
        cap = 64 * 1024 * 1024          # conservative fallback (v7x-sized)
    return int(min(cap * 3 // 4, 100 * 1024 * 1024))


def _pick_batch_tile(B, tb):
    # Big batch tiles (512-1024) for mem-bound efficiency, but cap at
    # ceil(B/2) when B >= 16 so the grid has >= 2 batch steps and both of
    # v7x's TensorCores get work (no-op on single-core v5e/v6e).
    tb = max(8, min(tb, _round_up(B, 8)))
    if B >= 16:
        tb = min(tb, _round_up(-(-B // 2), 8))
    return _round_up(tb, 8)


def _pick_label_tile(L, tl):
    # Lane-dense label tile (multiple of 128); 256 keeps the 256-wide MXU on
    # v6e/v7x fully fed once n_labels grows past 128.
    tl = max(128, min(tl, _round_up(L, 128)))
    return _round_up(tl, 128)


def _wspec(shape, index_map, resident):
    # When the block index never changes (single label tile) the weight stays
    # resident in VMEM; request single buffering so it is not double-buffered
    # for nothing (matters on v7x's 64 MiB VMEM at production F / n_labels).
    if resident:
        try:
            return pl.BlockSpec(shape, index_map, pipeline_mode=pl.Buffered(1))
        except (TypeError, AttributeError):
            pass
    return pl.BlockSpec(shape, index_map)


def gzxml_blend_kernel(x_ref, wf_ref, bf_ref, wy_ref, by_ref,
                       beta_full_ref, beta_ref, y_ref):
    # fcl1 logits for this (batch, label) tile: (TB, TL), f32 MXU accumulation.
    logits = jnp.dot(x_ref[...], wf_ref[...],
                     preferred_element_type=jnp.float32) + bf_ref[...]
    # rho = sigmoid(fc_y(beta))[:, label-tile]: contracts over the FULL label
    # dimension, so it reads the untiled beta block.
    rho = jax.nn.sigmoid(
        jnp.dot(beta_full_ref[...], wy_ref[...],
                preferred_element_type=jnp.float32) + by_ref[...])
    beta_t = beta_ref[...].astype(jnp.float32)
    # factor1/factor2 folded: y = (sigmoid(logits) + rho*beta) / (1 + rho).
    # One EUP reciprocal (separate VLIW slot) replaces the VPU divide; the
    # post-matmul elementwise math stays f32 (v5e has no bf16 VPU/EUP).
    y = (jax.nn.sigmoid(logits) + rho * beta_t) * pl.reciprocal(1.0 + rho,
                                                                approx=True)
    y_ref[...] = y.astype(y_ref.dtype)


def gzxml_logits_kernel(x_ref, wf_ref, bf_ref, y_ref):
    # beta=None branch: y_pre is just the raw fcl1 logits.
    y_ref[...] = (jnp.dot(x_ref[...], wf_ref[...],
                          preferred_element_type=jnp.float32)
                  + bf_ref[...]).astype(y_ref.dtype)


@functools.partial(jax.jit, static_argnames=("tb", "tl", "out_dtype"))
def gzxml_forward(new_feature, w_fcl, b_fcl, w_fcy, b_fcy, beta,
                  *, tb=512, tl=256, out_dtype=jnp.bfloat16):
    """GZXML forward, new_feature + beta path. Returns y_pre of shape (B, L).

    Pass new_feature / beta / weights as bf16 end-to-end (halves the HBM-bound
    activation stream). Do NOT cast in a wrapper: that adds a full extra HBM
    read+write of x and erases the win. Biases may stay f32 (tiny).
    """
    B, F = new_feature.shape
    L = w_fcl.shape[1]

    tb = _pick_batch_tile(B, tb)
    tl = _pick_label_tile(L, tl)
    B_pad, L_pad = _round_up(B, tb), _round_up(L, tl)
    nb, nl = B_pad // tb, L_pad // tl

    # Ragged batch / label counts: zero-pad instead of asserting divisibility.
    x = jnp.pad(new_feature, ((0, B_pad - B), (0, 0))) if B_pad != B else new_feature
    bt = beta
    if B_pad != B or L_pad != L:
        bt = jnp.pad(beta, ((0, B_pad - B), (0, L_pad - L)))
    wf = jnp.pad(w_fcl, ((0, 0), (0, L_pad - L))) if L_pad != L else w_fcl
    bf = jnp.pad(b_fcl, ((0, 0), (0, L_pad - L))) if L_pad != L else b_fcl
    wy = jnp.pad(w_fcy, ((0, L_pad - L), (0, L_pad - L))) if L_pad != L else w_fcy
    by = jnp.pad(b_fcy, ((0, 0), (0, L_pad - L))) if L_pad != L else b_fcy

    cost = pl.CostEstimate(
        flops=2 * B_pad * F * L_pad + 2 * B_pad * L_pad * L_pad + 6 * B_pad * L_pad,
        transcendentals=3 * B_pad * L_pad,     # two sigmoids + one EUP reciprocal
        bytes_accessed=int(_nbytes(x)
                           + nb * (_nbytes(wf) + _nbytes(bf) + _nbytes(wy) + _nbytes(by))
                           + 2 * _nbytes(bt)
                           + B_pad * L_pad * jnp.dtype(out_dtype).itemsize),
    )

    resident = (nl == 1)   # weights constant across the whole grid -> 1 buffer
    out = pl.pallas_call(
        gzxml_blend_kernel,
        out_shape=jax.ShapeDtypeStruct((B_pad, L_pad), out_dtype),
        grid=(nb, nl),
        in_specs=[
            pl.BlockSpec((tb, F), lambda i, j: (i, 0)),          # x: batch-streamed
            _wspec((F, tl), lambda i, j: (0, j), resident),      # W_fcl column block
            _wspec((1, tl), lambda i, j: (0, j), resident),      # b_fcl
            _wspec((L_pad, tl), lambda i, j: (0, j), resident),  # W_fcy column block
            _wspec((1, tl), lambda i, j: (0, j), resident),      # b_fcy
            pl.BlockSpec((tb, L_pad), lambda i, j: (i, 0)),      # beta (full, fc_y)
            pl.BlockSpec((tb, tl), lambda i, j: (i, j)),         # beta (label tile)
        ],
        out_specs=pl.BlockSpec((tb, tl), lambda i, j: (i, j)),   # lane-dense
        compiler_params=pltpu.CompilerParams(
            dimension_semantics=("parallel", "parallel"),
            vmem_limit_bytes=_vmem_limit_bytes(),
        ),
        cost_estimate=cost,
    )(x, wf, bf, wy, by, bt, bt)
    return out[:B, :L]


@functools.partial(jax.jit, static_argnames=("tb", "tl", "out_dtype"))
def gzxml_logits(new_feature, w_fcl, b_fcl, *, tb=512, tl=256,
                 out_dtype=jnp.float32):
    """GZXML forward, beta=None path: y_pre = fcl1(new_feature)."""
    B, F = new_feature.shape
    L = w_fcl.shape[1]

    tb = _pick_batch_tile(B, tb)
    tl = _pick_label_tile(L, tl)
    B_pad, L_pad = _round_up(B, tb), _round_up(L, tl)
    nb, nl = B_pad // tb, L_pad // tl

    x = jnp.pad(new_feature, ((0, B_pad - B), (0, 0))) if B_pad != B else new_feature
    wf = jnp.pad(w_fcl, ((0, 0), (0, L_pad - L))) if L_pad != L else w_fcl
    bf = jnp.pad(b_fcl, ((0, 0), (0, L_pad - L))) if L_pad != L else b_fcl

    cost = pl.CostEstimate(
        flops=2 * B_pad * F * L_pad,
        transcendentals=0,
        bytes_accessed=int(_nbytes(x) + nb * (_nbytes(wf) + _nbytes(bf))
                           + B_pad * L_pad * jnp.dtype(out_dtype).itemsize),
    )

    resident = (nl == 1)
    out = pl.pallas_call(
        gzxml_logits_kernel,
        out_shape=jax.ShapeDtypeStruct((B_pad, L_pad), out_dtype),
        grid=(nb, nl),
        in_specs=[
            pl.BlockSpec((tb, F), lambda i, j: (i, 0)),
            _wspec((F, tl), lambda i, j: (0, j), resident),
            _wspec((1, tl), lambda i, j: (0, j), resident),
        ],
        out_specs=pl.BlockSpec((tb, tl), lambda i, j: (i, j)),
        compiler_params=pltpu.CompilerParams(
            dimension_semantics=("parallel", "parallel"),
            vmem_limit_bytes=_vmem_limit_bytes(),
        ),
        cost_estimate=cost,
    )(x, wf, bf)
    return out[:B, :L]


def init_linear(key, fan_in, fan_out, w_dtype=jnp.bfloat16):
    # Mirrors PyTorch nn.Linear default init: U(-1/sqrt(fan_in), 1/sqrt(fan_in)).
    # Weights stored bf16 end-to-end (MXU inputs), biases stay f32.
    kw, kb = jax.random.split(key)
    bound = 1.0 / float(fan_in) ** 0.5
    w = jax.random.uniform(kw, (fan_in, fan_out), jnp.float32,
                           -bound, bound).astype(w_dtype)
    b = jax.random.uniform(kb, (1, fan_out), jnp.float32, -bound, bound)
    return w, b


if __name__ == "__main__":
    # Small shapes implied by the module: new_feature is (batch, feature_layers*768),
    # fcl1: Linear(feature_layers*768, n_labels), fc_y: Linear(n_labels, n_labels),
    # beta: (batch, n_labels) label prior in [0, 1).
    # batch=24 is deliberately ragged (exercises padding); n_labels=256 with
    # tl=128 exercises the label-tiled grid axis.
    batch, feature_layers, n_labels = 24, 1, 256
    feat_dim = feature_layers * 768

    key = jax.random.PRNGKey(0)
    kx, kbeta, k1, k2 = jax.random.split(key, 4)

    # bf16 activations / priors end-to-end (the HBM-bound stream); biases f32.
    x = jax.random.normal(kx, (batch, feat_dim), jnp.float32).astype(jnp.bfloat16)
    beta = jax.random.uniform(kbeta, (batch, n_labels), jnp.float32).astype(jnp.bfloat16)
    w_fcl, b_fcl = init_linear(k1, feat_dim, n_labels)
    w_fcy, b_fcy = init_linear(k2, n_labels, n_labels)

    # tl=128 only to exercise the multi-label-tile path at toy n_labels; the
    # production default is tl=256 (full MXU width). tb is auto-capped to 16
    # here (ceil(B/2)) so the grid has 2 batch steps.
    y_pre = gzxml_forward(x, w_fcl, b_fcl, w_fcy, b_fcy, beta, tl=128)  # beta path
    logits = gzxml_logits(x, w_fcl, b_fcl, tl=128)                      # beta=None path
    jax.block_until_ready((y_pre, logits))

    # Pure-JAX f32 reference over the same bf16-valued inputs.
    xf, bef = x.astype(jnp.float32), beta.astype(jnp.float32)
    wfl, wfy = w_fcl.astype(jnp.float32), w_fcy.astype(jnp.float32)
    logits_ref = xf @ wfl + b_fcl
    rho_ref = jax.nn.sigmoid(bef @ wfy + b_fcy)
    f1 = 1.0 / (rho_ref + 1.0)
    y_ref = f1 * jax.nn.sigmoid(logits_ref) + (1.0 - f1) * bef

    assert logits.shape == (batch, n_labels) and y_pre.shape == (batch, n_labels)
    assert jnp.allclose(logits.astype(jnp.float32), logits_ref, atol=1e-3, rtol=1e-3)
    # bf16 output + approx EUP reciprocal -> ~1e-2 tolerance.
    assert jnp.allclose(y_pre.astype(jnp.float32), y_ref, atol=2e-2, rtol=2e-2)

    print("KERNEL_OK")
</pallas_src>

<mosaic_0001>
module attributes {stable_mosaic.version = 11 : i64} {
  func.func @gzxml_blend_kernel(%arg0: i32, %arg1: i32, %arg2: memref<16x768xbf16, #tpu.memory_space<vmem>>, %arg3: memref<768x128xbf16, #tpu.memory_space<vmem>>, %arg4: memref<1x128xf32, #tpu.memory_space<vmem>>, %arg5: memref<256x128xbf16, #tpu.memory_space<vmem>>, %arg6: memref<1x128xf32, #tpu.memory_space<vmem>>, %arg7: memref<16x256xbf16, #tpu.memory_space<vmem>>, %arg8: memref<16x128xbf16, #tpu.memory_space<vmem>>, %arg9: memref<16x128xbf16, #tpu.memory_space<vmem>>) attributes {dimension_semantics = [#tpu.dimension_semantics<parallel>, #tpu.dimension_semantics<parallel>], iteration_bounds = array<i64: 2, 2>, scalar_prefetch = 0 : i64, scratch_operands = 0 : i64, tpu.core_type = #tpu.core_type<tc>, window_params = [{transform_indices = @transform_0, window_bounds = array<i64: 16, 768>}, {transform_indices = @transform_1, window_bounds = array<i64: 768, 128>}, {transform_indices = @transform_2, window_bounds = array<i64: 1, 128>}, {transform_indices = @transform_3, window_bounds = array<i64: 256, 128>}, {transform_indices = @transform_4, window_bounds = array<i64: 1, 128>}, {transform_indices = @transform_5, window_bounds = array<i64: 16, 256>}, {transform_indices = @transform_6, window_bounds = array<i64: 16, 128>}, {transform_indices = @transform_7, window_bounds = array<i64: 16, 128>}]} {
    %c0 = arith.constant 0 : index
    %c0_0 = arith.constant 0 : index
    %0 = vector.load %arg2[%c0, %c0_0] : memref<16x768xbf16, #tpu.memory_space<vmem>>, vector<16x768xbf16>
    %c0_1 = arith.constant 0 : index
    %c0_2 = arith.constant 0 : index
    %1 = vector.load %arg3[%c0_1, %c0_2] : memref<768x128xbf16, #tpu.memory_space<vmem>>, vector<768x128xbf16>
    %cst = arith.constant dense<0.000000e+00> : vector<16x128xf32>
    %2 = tpu.matmul %0, %1, %cst {dimension_numbers = #tpu.dot_dimension_numbers<[1], [0], [0], [1], [0, 0, 1, 1], [], []>} : vector<16x768xbf16>, vector<768x128xbf16>, vector<16x128xf32> -> vector<16x128xf32>
    %c0_3 = arith.constant 0 : index
    %c0_4 = arith.constant 0 : index
    %3 = vector.load %arg4[%c0_3, %c0_4] : memref<1x128xf32, #tpu.memory_space<vmem>>, vector<1x128xf32>
    %4 = vector.broadcast %3 : vector<1x128xf32> to vector<16x128xf32>
    %5 = arith.addf %2, %4 : vector<16x128xf32>
    %c0_5 = arith.constant 0 : index
    %c0_6 = arith.constant 0 : index
    %6 = vector.load %arg7[%c0_5, %c0_6] : memref<16x256xbf16, #tpu.memory_space<vmem>>, vector<16x256xbf16>
    %c0_7 = arith.constant 0 : index
    %c0_8 = arith.constant 0 : index
    %7 = vector.load %arg5[%c0_7, %c0_8] : memref<256x128xbf16, #tpu.memory_space<vmem>>, vector<256x128xbf16>
    %cst_9 = arith.constant dense<0.000000e+00> : vector<16x128xf32>
    %8 = tpu.matmul %6, %7, %cst_9 {dimension_numbers = #tpu.dot_dimension_numbers<[1], [0], [0], [1], [0, 0, 1, 1], [], []>} : vector<16x256xbf16>, vector<256x128xbf16>, vector<16x128xf32> -> vector<16x128xf32>
    %c0_10 = arith.constant 0 : index
    %c0_11 = arith.constant 0 : index
    %9 = vector.load %arg6[%c0_10, %c0_11] : memref<1x128xf32, #tpu.memory_space<vmem>>, vector<1x128xf32>
    %10 = vector.broadcast %9 : vector<1x128xf32> to vector<16x128xf32>
    %11 = arith.addf %8, %10 : vector<16x128xf32>
    %12 = arith.negf %11 : vector<16x128xf32>
    %13 = math.exp %12 : vector<16x128xf32>
    %cst_12 = arith.constant 1.000000e+00 : f32
    %14 = vector.broadcast %cst_12 : f32 to vector<16x128xf32>
    %15 = arith.addf %14, %13 : vector<16x128xf32>
    %16 = arith.divf %14, %15 : vector<16x128xf32>
    %c0_13 = arith.constant 0 : index
    %c0_14 = arith.constant 0 : index
    %17 = vector.load %arg8[%c0_13, %c0_14] : memref<16x128xbf16, #tpu.memory_space<vmem>>, vector<16x128xbf16>
    %18 = arith.extf %17 : vector<16x128xbf16> to vector<16x128xf32>
    %19 = arith.negf %5 : vector<16x128xf32>
    %20 = math.exp %19 : vector<16x128xf32>
    %cst_15 = arith.constant 1.000000e+00 : f32
    %21 = vector.broadcast %cst_15 : f32 to vector<16x128xf32>
    %22 = arith.addf %21, %20 : vector<16x128xf32>
    %23 = arith.divf %21, %22 : vector<16x128xf32>
    %24 = arith.mulf %16, %18 : vector<16x128xf32>
    %25 = arith.addf %23, %24 : vector<16x128xf32>
    %cst_16 = arith.constant 1.000000e+00 : f32
    %26 = vector.broadcast %cst_16 : f32 to vector<16x128xf32>
    %27 = arith.addf %26, %16 : vector<16x128xf32>
    %28 = tpu.reciprocal %27 {approx = true} : vector<16x128xf32> -> vector<16x128xf32>
    %29 = arith.mulf %25, %28 : vector<16x128xf32>
    %30 = arith.truncf %29 : vector<16x128xf32> to vector<16x128xbf16>
    %c0_17 = arith.constant 0 : index
    %c0_18 = arith.constant 0 : index
    %31 = vector.load %arg9[%c0_17, %c0_18] : memref<16x128xbf16, #tpu.memory_space<vmem>>, vector<16x128xbf16>
    tpu.vector_store %arg9[%c0_17, %c0_18], %30 {strides = array<i32>} : memref<16x128xbf16, #tpu.memory_space<vmem>>, vector<16x128xbf16>,
    return
  }
  func.func @transform_0(%arg0: i32, %arg1: i32) -> (i32, i32) {
    %c0_i32 = arith.constant 0 : i32
    %c0_i32_0 = arith.constant 0 : i32
    return %arg0, %c0_i32 : i32, i32
  }
  func.func @transform_1(%arg0: i32, %arg1: i32) -> (i32, i32) {
    %c0_i32 = arith.constant 0 : i32
    %c0_i32_0 = arith.constant 0 : i32
    return %c0_i32, %arg1 : i32, i32
  }
  func.func @transform_2(%arg0: i32, %arg1: i32) -> (i32, i32) {
    %c0_i32 = arith.constant 0 : i32
    %c0_i32_0 = arith.constant 0 : i32
    return %c0_i32, %arg1 : i32, i32
  }
  func.func @transform_3(%arg0: i32, %arg1: i32) -> (i32, i32) {
    %c0_i32 = arith.constant 0 : i32
    %c0_i32_0 = arith.constant 0 : i32
    return %c0_i32, %arg1 : i32, i32
  }
  func.func @transform_4(%arg0: i32, %arg1: i32) -> (i32, i32) {
    %c0_i32 = arith.constant 0 : i32
    %c0_i32_0 = arith.constant 0 : i32
    return %c0_i32, %arg1 : i32, i32
  }
  func.func @transform_5(%arg0: i32, %arg1: i32) -> (i32, i32) {
    %c0_i32 = arith.constant 0 : i32
    %c0_i32_0 = arith.constant 0 : i32
    return %arg0, %c0_i32 : i32, i32
  }
  func.func @transform_6(%arg0: i32, %arg1: i32) -> (i32, i32) {
    %c0_i32 = arith.constant 0 : i32
    return %arg0, %arg1 : i32, i32
  }
  func.func @transform_7(%arg0: i32, %arg1: i32) -> (i32, i32) {
    %c0_i32 = arith.constant 0 : i32
    return %arg0, %arg1 : i32, i32
  }
}

</mosaic_0001>

<bundles_post_ra>
// kernel: gzxml_forward.1
= control target key start
LH: loop header
LB: loop body
LE: loop exit
PB: predicated region body
PF: predicated region fallthrough
CT: control target
= control target key end

     0   :  { %s2405_s0 = inlined_call_operand.vmem [shape: bf16[32,768], index: 0, kind: input, shape index: {}]   ;;  %s2406_s1 = inlined_call_operand.hbm [shape: bf16[768,256], index: 1, kind: input, shape index: {}]   ;;  %s2407_s2 = inlined_call_operand.vmem [shape: f32[1,256], index: 2, kind: input, shape index: {}]   ;;  %s2408_s3 = inlined_call_operand.hbm [shape: bf16[256,256], index: 3, kind: input, shape index: {}]   ;;  %s2409_s4 = inlined_call_operand.vmem [shape: f32[1,256], index: 4, kind: input, shape index: {}]   ;;  %s2410_s5 = inlined_call_operand.vmem [shape: bf16[32,256], index: 5, kind: input, shape index: {}, may-alias: {5,6}]   ;;  %s2411_s6 = inlined_call_operand.vmem [shape: bf16[32,256], index: 6, kind: input, shape index: {}, may-alias: {5,6}]   ;;  %s2412_s7 = inlined_call_operand.vmem [shape: bf16[32,256], index: 7, kind: output, shape index: {}]  }
   0x1   :  { %2420 = sst [smem:[#allocation17_spill]] %s2406_s1 }
   0x2   :  { %2421 = sst [smem:[#allocation18_spill]] %s2409_s4 }
   0x3   :  { %2422 = sst [smem:[#allocation19_spill]] %s2412_s7 }
   0x4   :  { %12 = vsyncpa [#allocation3], 0 }
   0x5   :  { %14 = vsyncpa [#allocation3 + $0x1], 0 }
   0x6   :  { %15 = vsyncpa [#allocation5], 0 }
   0x7   :  { %17 = vsyncpa [#allocation5 + $0x1], 0  ;;  %s2080_s24 = smov 0   ;;  %s2082_s25 = smov 0  }
   0x8   :  { %s2084_s26 = smov 0   ;;  %s2086_s27 = smov 0  }
   0x9   :  { %s2088_s28 = smov 0   ;;  %s2090_s29 = smov 0  }
   0xa   :  { %s2092_s30 = smov 0   ;;  %s2094_s8 = smov 0  }
   0xb   :  { %s2096_s9 = smov 0   ;;  %s2098_s10 = smov 0  }
   0xc LB: > { %2423 = sst [smem:[#allocation10_spill]] %s1997_s24  ;;  %s1497_s11 = sadd.s32 4294967295, %s2033_s10   ;;  %s2033_s10 = sphi %s2098_s10, %s23_s10   ;;  %s2029_s9 = sphi %s2096_s9, %s2454_s9   ;;  %s2025_s8 = sphi %s2094_s8, %s2453_s8   ;;  %s2021_s30 = sphi %s2092_s30, %s2452_s30   ;;  %s2017_s29 = sphi %s2090_s29, %s2451_s29   ;;  %s2013_s28 = sphi %s2088_s28, %s2444_s28   ;;  %s2009_s27 = sphi %s2086_s27, %s2450_s27   ;;  %s2005_s26 = sphi %s2084_s26, %s2449_s26   ;;  %s2001_s25 = sphi %s2082_s25, %s2448_s25   ;;  %s1997_s24 = sphi %s2080_s24, %s2447_s24  }
   0xd   : > { %2424 = sst [smem:[#allocation11_spill]] %s2013_s28  ;;  %s32_s12 = sadd.s32 1, %s2025_s8 }
   0xe   : > { %p33_p0 = scmp.ge.s32.totalorder %s32_s12, 2  ;;  %s35_s13 = sadd.s32 1, %s2029_s9 }
   0xf   : > { %s68_s14 = sadd.s32 1, %s2013_s28  ;;  %p75_p1 = scmp.ne.s32.totalorder %s2013_s28, %s2009_s27 }
  0x10   : > { %s2456_s12 = smov (%p33_p0, %s32_s12), 0  ;;  %s2458_s13 = smov (!%p33_p0, %s35_s13), %s2029_s9 }
  0x11   : > { %2425 = sst [smem:[#allocation12_spill]] %s2456_s12  ;;  %s65_s15 = ssub.s32 %s2025_s8, %s2456_s12 }
  0x12   : > { %p76_p2 = scmp.eq.s32.totalorder %s2033_s10, 0  ;;  %p37_p3 = scmp.ge.s32.totalorder %s2458_s13, 2 }
  0x13   : > { %p66_p4 = scmp.eq.s32.totalorder %s65_s15, 0  ;;  %p81_p6 = scmp.ne.s32.totalorder %s2009_s27, %s2005_s26 }
  0x14   : > { %p2142_p5 = por %p76_p2, %p75_p1  ;;  %s2460_s13 = smov (%p37_p3, %s2458_s13), 0 }
  0x15   : > { %2427 = sst [smem:[#allocation13_spill]] %s2460_s13  ;;  %p82_p7 = scmp.eq.s32.totalorder %s1497_s11, 0 }
  0x16   : > { %s2150_s17 = scalar_select %p66_p4, %s2013_s28, %s68_s14  }
  0x17   : > { %s195_s18 = ssub.s32 %s2029_s9, %s2460_s13  ;;  %s200_s20 = sadd.s32 1, %s2001_s25 }
  0x18   : > { %2428 = sst [smem:[#allocation14_spill]] %s2150_s17  ;;  %s197_s19 = sor.u32 %s195_s18, %s65_s15 }
  0x19   : > { %p2155_p8 = por %p82_p7, %p81_p6  ;;  %p198_p9 = scmp.eq.s32.totalorder %s197_s19, 0 }
  0x1a   : > { %p207_p10 = scmp.ne.s32.totalorder %s2001_s25, %s1997_s24  ;;  %p239_p11 = scmp.eq.s32.totalorder %s1497_s11, 3 }
  0x1b   : > { %s2429_s21 = scalar_select %p2155_p8, 1, 0 }
  0x1c   : > { %s2162_s22 = scalar_select %p198_p9, %s2001_s25, %s200_s20  }
  0x1d   : > { %p2166_p12 = por %p207_p10, %p76_p2  ;;  %p2170_p13 = por %p239_p11, %p207_p10 }
  0x1e   : > { %2430 = sst [smem:[#allocation15_spill]] %s2162_s22  ;;  %p1500_p0 = scmp.ge.s32.totalorder %s2033_s10, 4 }
  0x1f   : > { %s2432_s26 = scalar_select %p2170_p13, 1, 0 }
  0x20   : > { %261 = sbr.rel (%p1500_p0) target bundleno = 95 (0x5f), region = 16  ;;  %s2176_s14 = sand.u32 (!%p1500_p0), 1, %s2013_s28  }
  0x21   : > { %2433 = sst [smem:[#allocation16_spill]] %s2432_s26  ;;  %s2416_s11 = sshll.u32 (!%p1500_p0), %s2025_s8, 6 }
  0x22   : > { %s1705_s15 = smul.u32 (!%p1500_p0), 384, %s2176_s14  ;;  %s2434_s1 = sld [smem:[#allocation17_spill]] (!%p1500_p0) }
  0x23   : > { %s276_s17 = scalar_lea.sflag (!%p1500_p0), [#allocation3], %s2176_s14 }
  0x24   : > { %s279_s13 = scalar_lea.vmem (!%p1500_p0), [#allocation2], %s1705_s15 }
  0x25   : > { %s285_s12 = sshll.u32 (!%p1500_p0), %s279_s13, 4  ;;  %s2187_s12 = int_to_ptr.vmem [resolvable:$true] %s285_s12 }
  0x28   : > { %s2185_s20 = scalar_lea.hbm %s2434_s1, %s2416_s11  ;;  %s1895_s18 = scalar_lea.hbm %s2434_s1, 12288 }
  0x29   : > { %s1891_s28 = scalar_lea.hbm %s2185_s20, 6144  ;;  %p1896_p4 = scmp.lt.u32.totalorder %s2185_s20, %s2434_s1 }
  0x2a   : > { %p1892_p1 = scmp.ne.s32.totalorder %s2185_s20, %s1891_s28  ;;  %p1897_p6 = scmp.lt.u32.totalorder %s1895_s18, %s1891_s28 }
  0x2b   : > { %p1899_p9 = scmp.lt.u32.totalorder %s1891_s28, %s2185_s20 }
  0x2c   : > { %p1893_p2 = pnand %p1892_p1, %p2142_p5  ;;  %p1898_p7 = por %p1897_p6, %p1896_p4 }
  0x2e   : > { %p1894_p3 = pneg %p1893_p2  ;;  %p1900_p10 = por %p1899_p9, %p1898_p7 }
  0x30   : > { %p1901_p11 = pnand %p1900_p10, %p1894_p3 }
  0x32   : > { %1904 = shalt.err (!%p1901_p11)
}
  0x33   : > { %s1905_s13 = scalar_lea.vmem %s2187_s12, 6144  ;;  %s2035_s7 = smov [#allocation2]  }
  0x34   : > { %p1906_p0 = scmp.ne.s32.totalorder %s2187_s12, %s1905_s13  ;;  %s1909_s22 = sshll.u32 %s2035_s7, 4  ;;  %s1910_s22 = int_to_ptr.vmem [resolvable:$false] %s1909_s22 }
  0x35   : > { %s1911_s11 = scalar_lea.vmem %s1910_s22, 12288  ;;  %p1912_p13 = scmp.lt.s32.totalorder %s2187_s12, %s1910_s22 }
  0x36   : > { %p1907_p1 = pnand %p1906_p0, %p2142_p5  ;;  %p1913_p8 = scmp.lt.s32.totalorder %s1911_s11, %s1905_s13 }
  0x38   : > { %p1908_p2 = pneg %p1907_p1  ;;  %p1914_p4 = por %p1913_p8, %p1912_p13 }
  0x3a   : > { %p1915_p6 = pnand %p1914_p4, %p1908_p2 }
  0x3c   : > { %1918 = shalt.err (!%p1915_p6)
}
  0x3d   : > { %s2036_s28 = smov 128   ;;  %s2037_s15 = smov 64  }
  0x3e   : > { %s2038_s18 = smov 4   ;;  %s1502_s19 = sshll.u32 %s2176_s14, 7 }
  0x3f   : > { %1708 = dma.hbm_to_vmem [thread:$0]  (%p2142_p5), %s2185_s20, 6144, %s2187_s12, %s276_s17, %s2036_s28, %s2037_s15, %s2038_s18  }
  0x40   : > { %s2435_s13 = sshll.u32 %s2025_s8, 6  ;;  %s305_s1 = scalar_lea.vmem [#allocation4], %s1502_s19 }
  0x41   : > { %s2222_s11 = scalar_lea.hbm %s2408_s3, %s2435_s13  ;;  %s311_s26 = sshll.u32 %s305_s1, 4  ;;  %s2224_s26 = int_to_ptr.vmem [resolvable:$true] %s311_s26 }
  0x42   : > { %s302_s24 = scalar_lea.sflag [#allocation5], %s2176_s14  ;;  %s1919_s4 = scalar_lea.hbm %s2222_s11, 2048 }
  0x43   : > { %p1920_p8 = scmp.ne.s32.totalorder %s2222_s11, %s1919_s4  ;;  %s1923_s20 = scalar_lea.hbm %s2408_s3, 4096 }
  0x44   : > { %p1924_p7 = scmp.lt.u32.totalorder %s2222_s11, %s2408_s3  ;;  %p1925_p9 = scmp.lt.u32.totalorder %s1923_s20, %s1919_s4 }
  0x45   : > { %p1921_p13 = pnand %p1920_p8, %p2142_p5  ;;  %p1927_p11 = scmp.lt.u32.totalorder %s1919_s4, %s2222_s11 }
  0x46   : > { %p1926_p10 = por %p1925_p9, %p1924_p7 }
  0x47   : > { %p1922_p3 = pneg %p1921_p13 }
  0x48   : > { %p1928_p0 = por %p1927_p11, %p1926_p10 }
  0x4a   : > { %p1929_p1 = pnand %p1928_p0, %p1922_p3 }
  0x4c   : > { %1932 = shalt.err (!%p1929_p1)
}
  0x4d   : > { %s1933_s1 = scalar_lea.vmem %s2224_s26, 2048  ;;  %s2039_s19 = smov [#allocation4]  }
  0x4e   : > { %p1934_p2 = scmp.ne.s32.totalorder %s2224_s26, %s1933_s1  ;;  %s1937_s22 = sshll.u32 %s2039_s19, 4  ;;  %s1938_s22 = int_to_ptr.vmem [resolvable:$false] %s1937_s22 }
  0x4f   : > { %s1939_s12 = scalar_lea.vmem %s1938_s22, 4096  ;;  %p1940_p8 = scmp.lt.s32.totalorder %s2224_s26, %s1938_s22 }
  0x50   : > { %p1935_p4 = pnand %p1934_p2, %p2142_p5  ;;  %p1941_p13 = scmp.lt.s32.totalorder %s1939_s12, %s1933_s1 }
  0x52   : > { %p1936_p6 = pneg %p1935_p4  ;;  %p1942_p7 = por %p1941_p13, %p1940_p8 }
  0x54   : > { %p1943_p9 = pnand %p1942_p7, %p1936_p6 }
  0x56   : > { %1946 = shalt.err (!%p1943_p9)
}
  0x57   : > { %1709 = dma.hbm_to_vmem [thread:$0]  (%p2142_p5), %s2222_s11, 2048, %s2224_s26, %s302_s24, %s2036_s28, %s2037_s15, %s2038_s18  }
  0x58   : > { %336 = sbr.rel (!%p2166_p12) target bundleno = 95 (0x5f), region = 44  ;;  %s338_s4 = sand.u32 (%p2166_p12), 1, %s2001_s25  }
  0x59   : > { %s1603_s17 = sshll.u32 (%p2166_p12), %s2029_s9, 2  ;;  %s1504_s20 = sshll.u32 (%p2166_p12), %s338_s4, 3 }
  0x5a   : > { %s343_s13 = sadd.s32 (%p2166_p12), %s2025_s8, %s1603_s17  ;;  %s340_s14 = scalar_lea.vmem (%p2166_p12), [#allocation6], %s1504_s20 }
  0x5b   : > { %s1507_s7 = sshll.u32 (%p2166_p12), %s343_s13, 2 }
  0x5c   : > { %s345_s19 = scalar_lea.vmem (%p2166_p12), %s2411_s6, %s1507_s7 }
  0x5d   : > { %v361_v0 = vld [vmem:[%s345_s19] sm:$0xf] (%p2166_p12)  ;;  %v363_v1 = vld [vmem:[%s345_s19 + $0x8] sm:$0xf] (%p2166_p12) }
  0x5e   : > { %362 = vst [vmem:[%s340_s14] sm:$0xf] (%p2166_p12), %v361_v0  ;;  %364 = vst [vmem:[%s340_s14 + $0x4] sm:$0xf] (%p2166_p12), %v363_v1 }
  0x5f PF: > { %p1508_p5 = scmp.ge.s32.totalorder %s2033_s10, 1  ;;  %p390_p12 = scmp.lt.s32.totalorder %s2033_s10, 5 }
  0x61   : > { %p391_p3 = pnand %p1508_p5, %p390_p12 }
  0x62   : > { %s396_s24 = sand.u32 (!%p391_p3), 1, %s2009_s27   ;;  %p2436_p10 = scmp.ne.s32.totalorder (!%p391_p3), %s2429_s21, 0 }
  0x63   : > { %394 = sbr.rel (%p391_p3) target bundleno = 448 (0x1c0), region = 85  ;;  %s397_s26 = scalar_lea.sflag (!%p391_p3), [#allocation3], %s396_s24 }
  0x64   : > { %s1706_s23 = smul.u32 (!%p391_p3), 384, %s396_s24 }
  0x66   : > { %s2264_s28 = scalar_lea.vmem (!%p391_p3), [#allocation2], %s1706_s23 }
  0x6a   : > { %1988 = dma.done.wait (%p2436_p10), %s397_s26, 6144  }
  0x6b   : > { %1990 = vsyncadd (%p2436_p10), %s397_s26, 4294961152  ;;  %s1509_s15 = sshll.u32 %s396_s24, 7  ;;  %s406_s18 = scalar_lea.sflag [#allocation5], %s396_s24 }
  0x6c   : > { %s2270_s11 = scalar_lea.vmem [#allocation4], %s1509_s15 }
  0x6d   : > { %1992 = dma.done.wait (%p2436_p10), %s406_s18, 2048  }
  0x6e   : > { %1994 = vsyncadd (%p2436_p10), %s406_s18, 4294965248  ;;  %v1795_v2 = vld [vmem:[%s2264_s28 + $0x40] sm:$0xff]   ;;  %v1799_v6 = vld [vmem:[%s2264_s28 + $0x48] sm:$0xff]   ;;  %s1512_s21 = sshll.u32 %s2021_s30, 1  ;;  %p480_p0 = scmp.lt.s32.totalorder %s2017_s29, 1 }
  0x6f   : > { %v1796_v3 = vld [vmem:[%s2264_s28 + $0xc0] sm:$0xff]   ;;  %1617 = vmatprep.subr.bf16.mxu0 %v1795_v2  ;;  %v1800_v7 = vld [vmem:[%s2264_s28 + $0xc8] sm:$0xff]   ;;  %v1803_v10 = vld [vmem:[%s2264_s28 + $0x50] sm:$0xff]   ;;  %p474_p11 = scmp.lt.s32.totalorder %s1512_s21, 3  ;;  %s2438_s18 = sld [smem:[#allocation10_spill]] }
  0x70   : > { %v1797_v4 = vld [vmem:[%s2264_s28] sm:$0xff]   ;;  %1639 = vmatprep.subr.bf16.mxu1 %v1796_v3  ;;  %v1801_v8 = vld [vmem:[%s2264_s28 + $0x8] sm:$0xff]   ;;  %v1804_v11 = vld [vmem:[%s2264_s28 + $0xd0] sm:$0xff]   ;;  %s481_s1 = scalar_select %p480_p0, %s2017_s29, 1 }
  0x71   : > { %v1798_v5 = vld [vmem:[%s2264_s28 + $0x80] sm:$0xff]   ;;  %1618 = vmatpush3.bf16.msra.mxu0 %v1797_v4  ;;  %v1802_v9 = vld [vmem:[%s2264_s28 + $0x88] sm:$0xff]   ;;  %v1805_v12 = vld [vmem:[%s2264_s28 + $0x10] sm:$0xff]   ;;  %s2462_s21 = smov (!%p474_p11, %s1512_s21), 3  ;;  %s2439_s4 = sld [smem:[#allocation16_spill]] }
  0x72   : > { %1640 = vmatpush3.bf16.msra.mxu1 %v1798_v5  ;;  %1619 = vmatprep.subr.bf16.mxu0 %v1799_v6  ;;  %v1806_v13 = vld [vmem:[%s2264_s28 + $0x90] sm:$0xff]   ;;  %v1807_v14 = vld [vmem:[%s2264_s28 + $0x58] sm:$0xff]   ;;  %v1811_v18 = vld [vmem:[%s2264_s28 + $0x60] sm:$0xff]   ;;  %s1707_s22 = smul.u32 24, %s2462_s21  ;;  %s1604_s20 = sshll.u32 %s2462_s21, 3 }
  0x73   : > { %1641 = vmatprep.subr.bf16.mxu1 %v1800_v7  ;;  %v1808_v15 = vld [vmem:[%s2264_s28 + $0xd8] sm:$0xff]   ;;  %v1812_v19 = vld [vmem:[%s2264_s28 + $0xe0] sm:$0xff]   ;;  %v1815_v22 = vld [vmem:[%s2264_s28 + $0x68] sm:$0xff]   ;;  %s491_s16 = scalar_lea.vmem %s2410_s5, %s1604_s20  ;;  %s482_s24 = scalar_lea.vmem %s2407_s2, %s481_s1 }
  0x74   : > { %v1809_v16 = vld [vmem:[%s2264_s28 + $0x18] sm:$0xff]   ;;  %v1813_v20 = vld [vmem:[%s2264_s28 + $0x20] sm:$0xff]   ;;  %v1816_v23 = vld [vmem:[%s2264_s28 + $0xe8] sm:$0xff]   ;;  %s2313_s17 = scalar_lea.vmem %s2405_s0, %s1707_s22 }
  0x75   : > { %1620 = vmatpush3.bf16.msra.mxu0 %v1801_v8  ;;  %v1810_v17 = vld [vmem:[%s2264_s28 + $0x98] sm:$0xff]   ;;  %v1814_v21 = vld [vmem:[%s2264_s28 + $0xa0] sm:$0xff]   ;;  %v1817_v24 = vld [vmem:[%s2264_s28 + $0x28] sm:$0xff]  }
  0x76   : > { %1642 = vmatpush3.bf16.msra.mxu1 %v1802_v9  ;;  %1621 = vmatprep.subr.bf16.mxu0 %v1803_v10  ;;  %v1818_v25 = vld [vmem:[%s2264_s28 + $0xa8] sm:$0xff]   ;;  %v1819_v26 = vld [vmem:[%s2264_s28 + $0x70] sm:$0xff]   ;;  %v1823_v30 = vld [vmem:[%s2264_s28 + $0x78] sm:$0xff]  }
  0x77   : > { %1643 = vmatprep.subr.bf16.mxu1 %v1804_v11  ;;  %v1820_v27 = vld [vmem:[%s2264_s28 + $0xf0] sm:$0xff]   ;;  %v1824_v31 = vld [vmem:[%s2264_s28 + $0xf8] sm:$0xff]   ;;  %v1830_v36 = vld [vmem:[%s2313_s17 + $0x8] ss:$24 sps:$4 sm:$0xff]   ;;  %p2440_p1 = scmp.ne.s32.totalorder %s2439_s4, 0 }
  0x78   : > { %v1821_v28 = vld [vmem:[%s2264_s28 + $0x30] sm:$0xff]   ;;  %v1825_v32 = vld [vmem:[%s2264_s28 + $0x38] sm:$0xff]   ;;  %v1832_v37 = vld [vmem:[%s2313_s17 + $0xc] ss:$24 sps:$4 sm:$0xff]  }
  0x79   : > { %1622 = vmatpush3.bf16.msra.mxu0 %v1805_v12  ;;  %v1822_v29 = vld [vmem:[%s2264_s28 + $0xb0] sm:$0xff]   ;;  %v1826_v33 = vld [vmem:[%s2264_s28 + $0xb8] sm:$0xff]   ;;  %v1833_v38 = vld [vmem:[%s2264_s28 + $0x140] sm:$0xff]   ;;  %996 = vmatprep.mubr.bf16.mxu1 %v1832_v37 }
  0x7a   : > { %1644 = vmatpush3.bf16.msra.mxu1 %v1806_v13  ;;  %1623 = vmatprep.subr.bf16.mxu0 %v1807_v14  ;;  %v1827_v34 = vld [vmem:[%s2313_s17] ss:$24 sps:$4 sm:$0xff]   ;;  %v1829_v35 = vld [vmem:[%s2313_s17 + $0x4] ss:$24 sps:$4 sm:$0xff]   ;;  %v1837_v42 = vld [vmem:[%s2264_s28 + $0x148] sm:$0xff]  }
  0x7b   : > { %1645 = vmatprep.subr.bf16.mxu1 %v1808_v15  ;;  %955 = vmatprep.mubr.bf16.mxu0 %v1829_v35  ;;  %v1834_v39 = vld [vmem:[%s2270_s11 + $0x40] sm:$0xff]   ;;  %v1838_v43 = vld [vmem:[%s2270_s11 + $0x48] sm:$0xff]   ;;  %v1841_v46 = vld [vmem:[%s2264_s28 + $0x150] sm:$0xff]  }
  0x7c   : > { %v1835_v40 = vld [vmem:[%s2264_s28 + $0x100] sm:$0xff]   ;;  %v1839_v44 = vld [vmem:[%s2264_s28 + $0x108] sm:$0xff]   ;;  %v1842_v47 = vld [vmem:[%s2270_s11 + $0x50] sm:$0xff]  }
  0x7d   : > { %1624 = vmatpush3.bf16.msra.mxu0 %v1809_v16  ;;  %v1836_v41 = vld [vmem:[%s2270_s11] sm:$0xff]   ;;  %v1840_v45 = vld [vmem:[%s2270_s11 + $0x8] sm:$0xff]   ;;  %v1843_v48 = vld [vmem:[%s2264_s28 + $0x110] sm:$0xff]  }
  0x7e   : > { %1646 = vmatpush3.bf16.msra.mxu1 %v1810_v17  ;;  %1625 = vmatprep.subr.bf16.mxu0 %v1811_v18  ;;  %v1844_v49 = vld [vmem:[%s2270_s11 + $0x10] sm:$0xff]   ;;  %v1845_v50 = vld [vmem:[%s2264_s28 + $0x158] sm:$0xff]   ;;  %v1849_v54 = vld [vmem:[%s2264_s28 + $0x160] sm:$0xff]  }
  0x7f   : > { %1647 = vmatprep.subr.bf16.mxu1 %v1812_v19  ;;  %v1846_v51 = vld [vmem:[%s2270_s11 + $0x58] sm:$0xff]   ;;  %v1850_v55 = vld [vmem:[%s2270_s11 + $0x60] sm:$0xff]   ;;  %v1853_v58 = vld [vmem:[%s2264_s28 + $0x168] sm:$0xff]  }
  0x80   : > { %v1847_v52 = vld [vmem:[%s2264_s28 + $0x118] sm:$0xff]   ;;  %v1851_v56 = vld [vmem:[%s2264_s28 + $0x120] sm:$0xff]   ;;  %v1854_v59 = vld [vmem:[%s2270_s11 + $0x68] sm:$0xff]  }
  0x81   : > { %1626 = vmatpush3.bf16.msra.mxu0 %v1813_v20  ;;  %v1848_v53 = vld [vmem:[%s2270_s11 + $0x18] sm:$0xff]   ;;  %v1852_v57 = vld [vmem:[%s2270_s11 + $0x20] sm:$0xff]   ;;  %v1855_v60 = vld [vmem:[%s2264_s28 + $0x128] sm:$0xff]  }
  0x82   : > { %1648 = vmatpush3.bf16.msra.mxu1 %v1814_v21  ;;  %1627 = vmatprep.subr.bf16.mxu0 %v1815_v22  ;;  %v1856_v61 = vld [vmem:[%s2270_s11 + $0x28] sm:$0xff]   ;;  %v1857_v62 = vld [vmem:[%s2264_s28 + $0x170] sm:$0xff]   ;;  %v1861_v2 = vld [vmem:[%s2264_s28 + $0x178] sm:$0xff]  }
  0x83   : > { %1649 = vmatprep.subr.bf16.mxu1 %v1816_v23  ;;  %v1858_v63 = vld [vmem:[%s2270_s11 + $0x70] sm:$0xff]   ;;  %v1862_v3 = vld [vmem:[%s2270_s11 + $0x78] sm:$0xff]   ;;  %v1868_v8 = vld [vmem:[%s491_s16] ss:$8 sps:$4 sm:$0xff]  }
  0x84   : > { %v1859_v0 = vld [vmem:[%s2264_s28 + $0x130] sm:$0xff]   ;;  %v1863_v4 = vld [vmem:[%s2264_s28 + $0x138] sm:$0xff]   ;;  %v1870_v9 = vld [vmem:[%s491_s16 + $0x4] ss:$8 sps:$4 sm:$0xff]   ;;  %s2437_s28 = sld [smem:[#allocation18_spill]] }
  0x85   : > { %1628 = vmatpush3.bf16.msra.mxu0 %v1817_v24  ;;  %v1860_v1 = vld [vmem:[%s2270_s11 + $0x30] sm:$0xff]   ;;  %v1864_v5 = vld [vmem:[%s2270_s11 + $0x38] sm:$0xff]   ;;  %v1517_v12 = vld [vmem:[%s482_s24] ss:$0 sm:$0xff]  ;;  %s415_s11 = sand.u32 1, %s2438_s18  }
  0x86   : > { %1650 = vmatpush3.bf16.msra.mxu1 %v1818_v25  ;;  %1629 = vmatprep.subr.bf16.mxu0 %v1819_v26  ;;  %v1865_v6 = vld [vmem:[%s2313_s17 + $0x10] ss:$24 sps:$4 sm:$0xff]   ;;  %v1867_v7 = vld [vmem:[%s2313_s17 + $0x14] ss:$24 sps:$4 sm:$0xff]   ;;  %s1510_s21 = sshll.u32 %s415_s11, 3  ;;  %s1607_s17 = sshll.u32 (%p2440_p1), %s2021_s30, 2 }
  0x87   : > { %1651 = vmatprep.subr.bf16.mxu1 %v1820_v27  ;;  %s417_s22 = scalar_lea.vmem [#allocation6], %s1510_s21  ;;  %s472_s12 = scalar_lea.vmem [#allocation7], %s1510_s21 }
  0x88   : > { %s1291_s20 = sadd.s32 (%p2440_p1), %s2017_s29, %s1607_s17 }
  0x89   : > { %1630 = vmatpush3.bf16.msra.mxu0 %v1821_v28  ;;  %s1600_s13 = sshll.u32 (%p2440_p1), %s1291_s20, 2 }
  0x8a   : > { %1652 = vmatpush3.bf16.msra.mxu1 %v1822_v29  ;;  %1631 = vmatprep.subr.bf16.mxu0 %v1823_v30  ;;  %s485_s15 = scalar_lea.vmem %s2437_s28, %s481_s1  ;;  %s2441_s1 = sld [smem:[#allocation19_spill]] (%p2440_p1) }
  0x8b   : > { %1653 = vmatprep.subr.bf16.mxu1 %v1824_v31 }
  0x8d   : > { %1632 = vmatpush3.bf16.msra.mxu0 %v1825_v32  ;;  %v1572_v32 = vld [vmem:[%s485_s15] ss:$0 sm:$0xff] }
  0x8e   : > { %1654 = vmatpush3.bf16.msra.mxu1 %v1826_v33  ;;  %1661 = vmatprep.subr.bf16.mxu0 %v1833_v38 }
  0x8f   : > { %1683 = vmatprep.subr.bf16.mxu1 %v1834_v39 }
  0x90   : > { %956 = vmatmul.mubr.bf16.vlgmr.msra.gmra.mrb[0].mxu0 %v1827_v34  ;;  %s1293_s19 = scalar_lea.vmem (%p2440_p1), %s2441_s1, %s1600_s13 }
  0x91   : > { %997 = vmatmul.mubr.bf16.vlgmr.msra.gmra.mrb[0].mxu1 %v1830_v36  ;;  %1662 = vmatpush3.bf16.msra.mxu0 %v1835_v40 }
  0x92   : > { %1684 = vmatpush3.bf16.msra.mxu1 %v1836_v41  ;;  %1663 = vmatprep.subr.bf16.mxu0 %v1837_v42 }
  0x93   : > { %1685 = vmatprep.subr.bf16.mxu1 %v1838_v43  ;;  %1037 = vmatprep.mubr.bf16.mxu0 %v1867_v7 }
  0x94   : > { %1225 = vmatprep.mubr.bf16.mxu1 %v1870_v9 }
  0x95   : > { %1664 = vmatpush3.bf16.msra.mxu0 %v1839_v44 }
  0x96   : > { %1686 = vmatpush3.bf16.msra.mxu1 %v1840_v45  ;;  %1665 = vmatprep.subr.bf16.mxu0 %v1841_v46 }
  0x97   : > { %1687 = vmatprep.subr.bf16.mxu1 %v1842_v47 }
  0x99   : > { %1666 = vmatpush3.bf16.msra.mxu0 %v1843_v48 }
  0x9a   : > { %1688 = vmatpush3.bf16.msra.mxu1 %v1844_v49  ;;  %1667 = vmatprep.subr.bf16.mxu0 %v1845_v50 }
  0x9b   : > { %1689 = vmatprep.subr.bf16.mxu1 %v1846_v51 }
  0x9d   : > { %1668 = vmatpush3.bf16.msra.mxu0 %v1847_v52 }
  0x9e   : > { %1690 = vmatpush3.bf16.msra.mxu1 %v1848_v53  ;;  %1669 = vmatprep.subr.bf16.mxu0 %v1849_v54 }
  0x9f   : > { %1691 = vmatprep.subr.bf16.mxu1 %v1850_v55 }
  0xa1   : > { %1670 = vmatpush3.bf16.msra.mxu0 %v1851_v56  ;;  %v1609_v56 = vld [vmem:[%s417_s22] sm:$0xff]  }
  0xa2   : > { %1692 = vmatpush3.bf16.msra.mxu1 %v1852_v57  ;;  %1671 = vmatprep.subr.bf16.mxu0 %v1853_v58  ;;  %v1610_v57 = vunpack.c.l.bf16 %v1609_v56  ;;  %v1611_v58 = vunpack.c.h.bf16 %v1609_v56 }
  0xa3   : > { %1693 = vmatprep.subr.bf16.mxu1 %v1854_v59 }
  0xa5   : > { %1672 = vmatpush3.bf16.msra.mxu0 %v1855_v60 }
  0xa6   : > { %1694 = vmatpush3.bf16.msra.mxu1 %v1856_v61  ;;  %1673 = vmatprep.subr.bf16.mxu0 %v1857_v62 }
  0xa7   : > { %1695 = vmatprep.subr.bf16.mxu1 %v1858_v63 }
  0xa9   : > { %1674 = vmatpush3.bf16.msra.mxu0 %v1859_v0 }
  0xaa   : > { %1696 = vmatpush3.bf16.msra.mxu1 %v1860_v1  ;;  %1675 = vmatprep.subr.bf16.mxu0 %v1861_v2 }
  0xab   : > { %1697 = vmatprep.subr.bf16.mxu1 %v1862_v3 }
  0xad   : > { %1676 = vmatpush3.bf16.msra.mxu0 %v1863_v4 }
  0xae   : > { %1698 = vmatpush3.bf16.msra.mxu1 %v1864_v5 }
  0xb0   : > { %1038 = vmatmul.mubr.bf16.vlgmr.msra.gmra.mrb[4].mxu0 %v1865_v6 }
  0xb1   : > { %1226 = vmatmul.mubr.bf16.vlgmr.msra.gmra.mrb[4].mxu1 %v1868_v8 }
 0x163   : > { %v1633_v10 = vpop.f32.mrb[0].mxu0 }
 0x164   : > { %v1655_v11 = vpop.f32.mrb[0].mxu1  ;;  %v1634_v13 = vpop.f32.mrb[1].mxu0 }
 0x165   : > { %v1635_v14 = vadd.f32 %v1634_v13, %v1633_v10  ;;  %v1656_v15 = vpop.f32.mrb[1].mxu1  ;;  %v1636_v16 = vpop.f32.mrb[2].mxu0 }
 0x166   : > { %v1657_v17 = vadd.f32 %v1656_v15, %v1655_v11  ;;  %v1658_v18 = vpop.f32.mrb[2].mxu1  ;;  %v1637_v19 = vpop.f32.mrb[3].mxu0 }
 0x167   : > { %v958_v20 = vadd.f32 %v1635_v14, %v1517_v12  ;;  %v1638_v21 = vadd.f32 %v1637_v19, %v1636_v16  ;;  %v1659_v22 = vpop.f32.mrb[3].mxu1 }
 0x168   : > { %v1660_v23 = vadd.f32 %v1659_v22, %v1658_v18 }
 0x169   : > { %v999_v24 = vadd.f32 %v1657_v17, %v958_v20  ;;  %v961_v25 = vadd.f32 %v1638_v21, %v1517_v12 }
 0x16b   : > { %v1002_v26 = vadd.f32 %v1660_v23, %v961_v25 }
 0x183   : > { %v1677_v27 = vpop.f32.mrb[4].mxu0 }
 0x184   : > { %v1678_v28 = vpop.f32.mrb[5].mxu0  ;;  %v1699_v29 = vpop.f32.mrb[4].mxu1 }
 0x185   : > { %v1679_v30 = vadd.f32 %v1678_v28, %v1677_v27  ;;  %v1680_v31 = vpop.f32.mrb[6].mxu0  ;;  %v1700_v33 = vpop.f32.mrb[5].mxu1 }
 0x186   : > { %v1681_v34 = vpop.f32.mrb[7].mxu0  ;;  %v1701_v36 = vadd.f32 %v1700_v33, %v1699_v29  ;;  %v1702_v37 = vpop.f32.mrb[6].mxu1 }
 0x187   : > { %v1040_v35 = vadd.f32 %v1679_v30, %v999_v24  ;;  %v1682_v38 = vadd.f32 %v1681_v34, %v1680_v31  ;;  %v1703_v39 = vpop.f32.mrb[7].mxu1 }
 0x188   : > { %v1228_v41 = vadd.f32 %v1701_v36, %v1572_v32  ;;  %v1704_v43 = vadd.f32 %v1703_v39, %v1702_v37 }
 0x189   : > { %v1593_v40 = vmul.f32 -1.442695, %v1040_v35  ;;  %v1043_v42 = vadd.f32 %v1682_v38, %v1002_v26 }
 0x18a   : > { %v1591_v44 = vmul.f32 -1.442695, %v1228_v41  ;;  %v1231_v46 = vadd.f32 %v1704_v43, %v1572_v32 }
 0x18b   : > { %1871 = vpow2.f32 %v1593_v40  ;;  %v1594_v45 = vmul.f32 -1.442695, %v1043_v42 }
 0x18c   : > { %1873 = vpow2.f32 %v1591_v44  ;;  %v1592_v47 = vmul.f32 -1.442695, %v1231_v46 }
 0x18d   : > { %1875 = vpow2.f32 %v1594_v45 }
 0x18e   : > { %1877 = vpow2.f32 %v1592_v47 }
 0x195   : > { %v1872_v48 = vpop.eup %1871 }
 0x196   : > { %v1874_v49 = vpop.eup %1873  ;;  %v1256_v50 = vadd.f32 1.0, %v1872_v48 }
 0x197   : > { %v1876_v51 = vpop.eup %1875  ;;  %v1240_v52 = vadd.f32 1.0, %v1874_v49 }
 0x198   : > { %v1878_v53 = vpop.eup %1877  ;;  %v1257_v54 = vadd.f32 1.0, %v1876_v51 }
 0x199   : > { %1879 = vrcp.f32 %v1240_v52  ;;  %v1241_v55 = vadd.f32 1.0, %v1878_v53 }
 0x19a   : > { %1881 = vrcp.f32 %v1256_v50 }
 0x19b   : > { %1883 = vrcp.f32 %v1241_v55 }
 0x19c   : > { %1885 = vrcp.f32 %v1257_v54 }
 0x1a3   : > { %v1880_v59 = vpop.eup %1879 }
 0x1a4   : > { %v1882_v60 = vpop.eup %1881  ;;  %v1262_v61 = vmul.f32 %v1880_v59, %v1610_v57  ;;  %v1266_v62 = vadd.f32 1.0, %v1880_v59 }
 0x1a5   : > { %v1884_v63 = vpop.eup %1883 }
 0x1a6   : > { %v1264_v0 = vadd.f32 %v1882_v60, %v1262_v61  ;;  %1887 = vrcp.f32 %v1266_v62  ;;  %v1263_v1 = vmul.f32 %v1884_v63, %v1611_v58  ;;  %v1267_v2 = vadd.f32 1.0, %v1884_v63  ;;  %v1886_v3 = vpop.eup %1885 }
 0x1a8   : > { %v1265_v4 = vadd.f32 %v1886_v3, %v1263_v1  ;;  %1889 = vrcp.f32 %v1267_v2 }
 0x1b0   : > { %v1888_v5 = vpop.eup %1887 }
 0x1b1   : > { %v1270_v6 = vmul.f32 %v1888_v5, %v1264_v0  ;;  %1288 = sbr.rel (!%p2440_p1) target bundleno = 448 (0x1c0), region = 101 }
 0x1b2   : > { %v1890_v7 = vpop.eup %1889 }
 0x1b3   : > { %v1271_v8 = vmul.f32 %v1890_v7, %v1265_v4 }
 0x1b5   : > { %v1615_v9 = vpack.c.bf16 %v1271_v8, %v1270_v6 }
 0x1b7   : > { %1616 = vst [vmem:[%s472_s12] sm:$0xff] %v1615_v9  }
 0x1be   : > { %v1309_v10 = vld [vmem:[%s472_s12] sm:$0xf]  ;;  %v1311_v11 = vld [vmem:[%s472_s12 + $0x4] sm:$0xf] }
 0x1bf   : > { %1310 = vst [vmem:[%s1293_s19] sm:$0xf] %v1309_v10  ;;  %1312 = vst [vmem:[%s1293_s19 + $0x8] sm:$0xf] %v1311_v11 }
 0x1c0 PF: > { %s23_s10 = sadd.s32 1, %s2033_s10   ;;  %s2442_s14 = sld [smem:[#allocation15_spill]] }
 0x1c1   : > { %p20_p2 = scmp.ge.s32.totalorder %s23_s10, 6   ;;  %s2443_s23 = sld [smem:[#allocation11_spill]] }
 0x1c2   : > { %s2444_s28 = sld [smem:[#allocation14_spill]]  ;;  %s2445_s15 = sld [smem:[#allocation12_spill]] }
 0x1c3   : > { %s2446_s18 = sld [smem:[#allocation13_spill]]  ;;  %s2447_s24 = smov %s2001_s25 }
 0x1c4   : > { %s2449_s26 = smov %s2009_s27  ;;  %s2451_s29 = smov %s2025_s8 }
 0x1c5   : > { %s2452_s30 = smov %s2029_s9  ;;  %22 = sbr.rel (!%p20_p2) target bundleno = 12 (0xc), region = 203 }
 0x1c6   : > { %s2448_s25 = smov %s2442_s14 }
 0x1c7   : > { %s2450_s27 = smov %s2443_s23 }
 0x1c8   : > { %s2453_s8 = smov %s2445_s15 }
 0x1c9   : > { %s2454_s9 = smov %s2446_s18 }
 0x1cc   :  { %1349 = vsyncpa [#allocation3], 1 }
 0x1cd   :  { %1351 = vsyncpa [#allocation3 + $0x1], 1 }
 0x1ce   :  { %1352 = vsyncpa [#allocation5], 1 }
 0x1cf   :  { %1354 = vsyncpa [#allocation5 + $0x1], 1 }

</bundles_post_ra>
